<compile_context>
chip_gen: v7x
topology: tpu7x:2x2x1
jax: 0.10.0
libtpu: 0.0.40
codegen_flags: <defaults>
</compile_context>

<pallas_src>
import functools
import math

import jax
import jax.numpy as jnp
from jax.experimental import pallas as pl
from jax.experimental.pallas import tpu as pltpu


def _round_up(x, m):
    return ((x + m - 1) // m) * m


def _gcn_kernel_resident(adj_ref, xw_ref, b_ref, out_ref, *, tk):
    """out[i] = sum_k adj[i, k] @ XW[k] + bias, XW fully VMEM-resident."""
    k = pl.program_id(1)

    @pl.when(k == 0)
    def _():
        out_ref[...] = jnp.broadcast_to(b_ref[...], out_ref.shape)

    start = pl.multiple_of(k * tk, tk)
    xw_tile = xw_ref[pl.ds(start, tk), :]
    out_ref[...] += jnp.dot(adj_ref[...], xw_tile,
                            preferred_element_type=jnp.float32)


def _gcn_kernel_streamed(adj_ref, xw_ref, b_ref, out_ref):
    """Same as above but XW is streamed one reduction tile at a time."""
    k = pl.program_id(1)

    @pl.when(k == 0)
    def _():
        out_ref[...] = jnp.broadcast_to(b_ref[...], out_ref.shape)

    out_ref[...] += jnp.dot(adj_ref[...], xw_ref[...],
                            preferred_element_type=jnp.float32)


def gcn_layer_sparse(features, adj, weight, bias=None, *, tm=256, tk=512,
                     resident_xw_budget=8 << 20):
    """features: [N, F_in], adj: [N, N] (dense row-normalized), weight:
    [F_in, F_out], bias: [F_out] or None.  Returns [N, F_out] float32."""
    N, F_in = features.shape
    F_out = weight.shape[1]

    # Clamp tiles to the problem size; keep bf16 (16, 128) alignment.
    tm = max(16, min(tm, _round_up(N, 16)))
    tk = max(128, min(tk, _round_up(N, 128)))
    assert tm % 16 == 0 and tk % 128 == 0, "tiles must be (16,128)-aligned"

    F_out_p = _round_up(F_out, 128)
    N_r = _round_up(N, tm)   # adj rows / output rows (independent padding)
    N_c = _round_up(N, tk)   # adj cols / XW rows

    f32 = jnp.float32

    # Tiny projection GEMM in plain-JAX f32, cast to bf16 once, pad rows/lanes.
    xw = jnp.dot(features.astype(f32), weight.astype(f32),
                 preferred_element_type=f32)
    xw_p = jnp.pad(xw.astype(jnp.bfloat16),
                   ((0, N_c - N), (0, F_out_p - F_out)))

    # Pad the adjacency *after* casting to bf16 (no padded f32 copy).
    adj_p = jnp.pad(adj.astype(jnp.bfloat16), ((0, N_r - N), (0, N_c - N)))

    b = bias if bias is not None else jnp.zeros((F_out,), f32)
    b_p = jnp.zeros((1, F_out_p), f32).at[0, :F_out].set(b.astype(f32))

    grid = (N_r // tm, N_c // tk)

    xw_bytes = N_c * F_out_p * 2
    resident = xw_bytes <= resident_xw_budget

    if resident:
        xw_spec = pl.BlockSpec((N_c, F_out_p), lambda i, k: (0, 0))
        kernel = functools.partial(_gcn_kernel_resident, tk=tk)
        xw_vmem = xw_bytes
    else:
        xw_spec = pl.BlockSpec((tk, F_out_p), lambda i, k: (k, 0))
        kernel = _gcn_kernel_streamed
        xw_vmem = 2 * tk * F_out_p * 2          # double-buffered stream

    # Explicit VMEM budget: adj double-buffer + XW + out double-buffer + bias,
    # plus headroom; clamped to stay inside v7x's 64 MiB physical VMEM.
    vmem_needed = (2 * tm * tk * 2              # adj (bf16), double-buffered
                   + xw_vmem
                   + 2 * tm * F_out_p * 4       # out (f32), double-buffered
                   + 2 * 8 * F_out_p * 4)       # bias row (padded)
    vmem_limit = int(min(max(vmem_needed + (4 << 20), 16 << 20), 48 << 20))

    out_p = pl.pallas_call(
        kernel,
        out_shape=jax.ShapeDtypeStruct((N_r, F_out_p), jnp.float32),
        grid_spec=pltpu.PrefetchScalarGridSpec(
            num_scalar_prefetch=0,
            grid=grid,
            in_specs=[
                # adj row-tile x reduction-tile, streamed every step.
                pl.BlockSpec((tm, tk), lambda i, k: (i, k)),
                # XW: resident (constant map) or streamed per k-tile.
                xw_spec,
                # bias: constant index_map -> fetched once, VMEM-resident.
                pl.BlockSpec((1, F_out_p), lambda i, k: (0, 0)),
            ],
            out_specs=pl.BlockSpec((tm, F_out_p), lambda i, k: (i, 0)),
        ),
        compiler_params=pltpu.CompilerParams(
            dimension_semantics=("parallel", "arbitrary"),
            vmem_limit_bytes=vmem_limit),
    )(adj_p, xw_p, b_p)

    return out_p[:N, :F_out]


if __name__ == "__main__":
    # Small shapes consistent with the module: N nodes, F_in -> F_out features.
    N, F_in, F_out = 512, 32, 64

    key = jax.random.PRNGKey(0)
    k_feat, k_w, k_adj = jax.random.split(key, 3)

    # Deterministic parameter init mirroring __init__ with init='xavier':
    # xavier_normal_ with gain=0.02 -> std = gain * sqrt(2 / (fan_in + fan_out))
    xavier_std = 0.02 * math.sqrt(2.0 / (F_in + F_out))
    weight = xavier_std * jax.random.normal(k_w, (F_in, F_out), dtype=jnp.float32)
    bias = jnp.zeros((F_out,), dtype=jnp.float32)   # nn.init.constant_(..., 0.0)

    # Inputs: node feature matrix + a row-normalized (~10% dense) adjacency.
    features = jax.random.normal(k_feat, (N, F_in), dtype=jnp.float32)
    adj_raw = (jax.random.uniform(k_adj, (N, N)) < 0.1).astype(jnp.float32)
    adj_raw = adj_raw + jnp.eye(N, dtype=jnp.float32)           # self loops
    adj = adj_raw / jnp.sum(adj_raw, axis=1, keepdims=True)     # row-normalize

    out = gcn_layer_sparse(features, adj, weight, bias)
    out = jax.block_until_ready(out)

    # Sanity check against plain-f32 JAX reference (bf16 matmul operands with
    # f32 accumulation -> relaxed tolerance).
    ref = adj @ (features @ weight) + bias[None, :]
    assert out.shape == (N, F_out)
    assert jnp.allclose(out, ref, atol=2e-3, rtol=2e-2), float(
        jnp.max(jnp.abs(out - ref)))

    print("KERNEL_OK")
</pallas_src>

<mosaic_0001>
module attributes {stable_mosaic.version = 11 : i64} {
  func.func @_gcn_kernel_resident(%arg0: i32, %arg1: i32, %arg2: memref<256x512xbf16, #tpu.memory_space<vmem>>, %arg3: memref<512x128xbf16, #tpu.memory_space<vmem>>, %arg4: memref<1x128xf32, #tpu.memory_space<vmem>>, %arg5: memref<256x128xf32, #tpu.memory_space<vmem>>) attributes {dimension_semantics = [#tpu.dimension_semantics<parallel>, #tpu.dimension_semantics<arbitrary>], iteration_bounds = array<i64: 2, 1>, scalar_prefetch = 0 : i64, scratch_operands = 0 : i64, tpu.core_type = #tpu.core_type<tc>, window_params = [{transform_indices = @transform_0, window_bounds = array<i64: 256, 512>}, {pipeline_mode = #tpu.pipeline_mode<synchronous>, transform_indices = @transform_1, window_bounds = array<i64: 512, 128>}, {pipeline_mode = #tpu.pipeline_mode<synchronous>, transform_indices = @transform_2, window_bounds = array<i64: 1, 128>}, {transform_indices = @transform_3, window_bounds = array<i64: 256, 128>}]} {
    %c0_i32 = arith.constant 0 : i32
    %0 = arith.cmpi eq, %arg1, %c0_i32 : i32
    %1 = arith.extui %0 : i1 to i32
    %c0_i32_0 = arith.constant 0 : i32
    %2 = arith.cmpi ne, %1, %c0_i32_0 : i32
    scf.if %2 {
      %c0_7 = arith.constant 0 : index
      %c0_8 = arith.constant 0 : index
      %12 = vector.load %arg4[%c0_7, %c0_8] : memref<1x128xf32, #tpu.memory_space<vmem>>, vector<1x128xf32>
      %13 = vector.shape_cast %12 : vector<1x128xf32> to vector<1x128xf32>
      %14 = vector.broadcast %13 : vector<1x128xf32> to vector<256x128xf32>
      %c0_9 = arith.constant 0 : index
      %c0_10 = arith.constant 0 : index
      %15 = vector.load %arg5[%c0_9, %c0_10] : memref<256x128xf32, #tpu.memory_space<vmem>>, vector<256x128xf32>
      tpu.vector_store %arg5[%c0_9, %c0_10], %14 {strides = array<i32>} : memref<256x128xf32, #tpu.memory_space<vmem>>, vector<256x128xf32>,
    } else {
    }
    %c512_i32 = arith.constant 512 : i32
    %3 = arith.muli %arg1, %c512_i32 : i32
    %4 = tpu.assume_multiple %3, 512 : i32
    %5 = arith.index_cast %4 : i32 to index
    %c0 = arith.constant 0 : index
    %6 = vector.load %arg3[%5, %c0] : memref<512x128xbf16, #tpu.memory_space<vmem>>, vector<512x128xbf16>
    %c0_1 = arith.constant 0 : index
    %c0_2 = arith.constant 0 : index
    %7 = vector.load %arg5[%c0_1, %c0_2] : memref<256x128xf32, #tpu.memory_space<vmem>>, vector<256x128xf32>
    %c0_3 = arith.constant 0 : index
    %c0_4 = arith.constant 0 : index
    %8 = vector.load %arg2[%c0_3, %c0_4] : memref<256x512xbf16, #tpu.memory_space<vmem>>, vector<256x512xbf16>
    %cst = arith.constant dense<0.000000e+00> : vector<256x128xf32>
    %9 = tpu.matmul %8, %6, %cst {dimension_numbers = #tpu.dot_dimension_numbers<[1], [0], [0], [1], [0, 0, 1, 1], [], []>} : vector<256x512xbf16>, vector<512x128xbf16>, vector<256x128xf32> -> vector<256x128xf32>
    %10 = arith.addf %7, %9 : vector<256x128xf32>
    %c0_5 = arith.constant 0 : index
    %c0_6 = arith.constant 0 : index
    %11 = vector.load %arg5[%c0_5, %c0_6] : memref<256x128xf32, #tpu.memory_space<vmem>>, vector<256x128xf32>
    tpu.vector_store %arg5[%c0_5, %c0_6], %10 {strides = array<i32>} : memref<256x128xf32, #tpu.memory_space<vmem>>, vector<256x128xf32>,
    return
  }
  func.func @transform_0(%arg0: i32, %arg1: i32) -> (i32, i32) {
    %c0_i32 = arith.constant 0 : i32
    return %arg0, %arg1 : i32, i32
  }
  func.func @transform_1(%arg0: i32, %arg1: i32) -> (i32, i32) {
    %c0_i32 = arith.constant 0 : i32
    %c0_i32_0 = arith.constant 0 : i32
    %c0_i32_1 = arith.constant 0 : i32
    return %c0_i32, %c0_i32_0 : i32, i32
  }
  func.func @transform_2(%arg0: i32, %arg1: i32) -> (i32, i32) {
    %c0_i32 = arith.constant 0 : i32
    %c0_i32_0 = arith.constant 0 : i32
    %c0_i32_1 = arith.constant 0 : i32
    return %c0_i32, %c0_i32_0 : i32, i32
  }
  func.func @transform_3(%arg0: i32, %arg1: i32) -> (i32, i32) {
    %c0_i32 = arith.constant 0 : i32
    %c0_i32_0 = arith.constant 0 : i32
    return %arg0, %c0_i32 : i32, i32
  }
}

</mosaic_0001>

<bundles_post_ra>
// kernel: tpu_custom_call.1
= control target key start
LH: loop header
LB: loop body
LE: loop exit
PB: predicated region body
PF: predicated region fallthrough
CT: control target
= control target key end

     0   :  { %8 = vsyncpa [#allocation3], 0  ;;  %s2523_s0 = inlined_call_operand.hbm [shape: bf16[512,512], index: 0, kind: input, shape index: {}]   ;;  %s2524_s1 = inlined_call_operand.hbm [shape: bf16[512,128], index: 1, kind: input, shape index: {}]   ;;  %s2525_s2 = inlined_call_operand.vmem [shape: f32[1,128], index: 2, kind: input, shape index: {}]   ;;  %s2526_s3 = inlined_call_operand.hbm [shape: f32[512,128], index: 3, kind: output, shape index: {}]  }
   0x1   :  { %10 = vsyncpa [#allocation3 + $0x1], 0 }
   0x2   :  { %11 = vsyncpa [#allocation6], 0 }
   0x3   :  { %12 = vsyncpa [#allocation4], 0 }
   0x4   :  { %14 = vsyncpa [#allocation4 + $0x1], 0  ;;  %s2165_s12 = smov 0   ;;  %s2167_s13 = smov 0  }
   0x5   :  { %s2169_s14 = smov 0   ;;  %s2171_s15 = smov 0  }
   0x6   :  { %s2173_s16 = smov 0   ;;  %s2175_s17 = smov 0  }
   0x7 LB: > { %s1441_s18 = sadd.s32 4294967295, %s2134_s17   ;;  %s1442_s19 = sadd.s32 4294967294, %s2134_s17   ;;  %s2134_s17 = sphi %s2175_s17, %s20_s17   ;;  %s2130_s16 = sphi %s2173_s16, %s2550_s16   ;;  %s2126_s15 = sphi %s2171_s15, %s2549_s15   ;;  %s2122_s14 = sphi %s2169_s14, %s2548_s14   ;;  %s2118_s13 = sphi %s2167_s13, %s2547_s13   ;;  %s2114_s12 = sphi %s2165_s12, %s2546_s12  }
   0x8   : > { %p54_p0 = scmp.ne.s32.totalorder %s2118_s13, %s2114_s12  ;;  %p2199_p1 = scmp.eq.s32.totalorder %s1441_s18, 0 }
   0x9   : > { %p2203_p2 = scmp.eq.s32.totalorder %s1441_s18, 1  ;;  %p126_p3 = scmp.eq.s32.totalorder %s1442_s19, 1 }
   0xa   : > { %s2531_s20 = scalar_select %p2199_p1, 1, 0 }
   0xb   : > { %s2532_s21 = scalar_select %p2203_p2, 1, 0 }
   0xc   : > { %p2209_p4 = por %p2199_p1, %p54_p0  ;;  %p1443_p5 = scmp.ge.s32.totalorder %s2134_s17, 1 }
   0xd   : > { %p2214_p6 = por %p126_p3, %p54_p0  ;;  %p133_p7 = scmp.lt.s32.totalorder %s2134_s17, 3 }
   0xe   : > { %s2533_s22 = scalar_select %p2209_p4, 1, 0 }
   0xf   : > { %s2534_s23 = scalar_select %p2214_p6, 1, 0 }
  0x10   : > { %p2219_p8 = pnand %p1443_p5, %p133_p7  ;;  %s2136_s25 = smov [#allocation5]  }
  0x11   : > { %s145_s26 = sshll.u32 %s2136_s25, 4  ;;  %s32_s28 = sadd.s32 1, %s2130_s16  ;;  %s146_s26 = int_to_ptr.vmem [resolvable:$true] %s145_s26 }
  0x12   : > { %s2535_s24 = scalar_select %p2219_p8, 1, 0 }
  0x13   : > { %p1791_p9 = pneg %p2219_p8  ;;  %s1990_s4 = scalar_lea.hbm %s2524_s1, 4096 }
  0x14   : > { %p1991_p12 = scmp.ne.s32.totalorder %s2524_s1, %s1990_s4  ;;  %p1997_p5 = scmp.lt.u32.totalorder %s1990_s4, %s2524_s1 }
  0x15   : > { %p2228_p11 = pnand %p1791_p9, %p2199_p1 }
  0x17   : > { %p1992_p13 = pneg %p2228_p11 }
  0x19   : > { %p1993_p0 = pnand %p1992_p13, %p1991_p12 }
  0x1b   : > { %p1994_p3 = pneg %p1993_p0 }
  0x1d   : > { %p1999_p7 = pnand %p1997_p5, %p1994_p3 }
  0x1f   : > { %2002 = shalt.err (!%p1999_p7)
}
  0x20   : > { %s2003_s9 = scalar_lea.vmem %s146_s26, 4096  ;;  %p2011_p1 = scmp.lt.s32.totalorder %s146_s26, %s146_s26 }
  0x21   : > { %p2004_p9 = scmp.ne.s32.totalorder %s146_s26, %s2003_s9  ;;  %p2012_p4 = scmp.lt.s32.totalorder %s2003_s9, %s2003_s9 }
  0x23   : > { %p2006_p10 = pnand %p2004_p9, %p1992_p13  ;;  %p2013_p8 = por %p2012_p4, %p2011_p1 }
  0x25   : > { %p2007_p6 = pneg %p2006_p10 }
  0x27   : > { %p2014_p2 = pnand %p2013_p8, %p2007_p6 }
  0x29   : > { %2017 = shalt.err (!%p2014_p2)
}
  0x2a   : > { %s2137_s10 = smov 64   ;;  %s2138_s11 = smov 4  }
  0x2b   : > { %1794 = dma.hbm_to_vmem [thread:$0]  (!%p2228_p11), %s2524_s1, 4096, %s146_s26, [#allocation6], %s2137_s10, %s2137_s10, %s2138_s11  }
  0x2c   : > { %p34_p1 = scmp.ge.s32.totalorder %s32_s28, 2  ;;  %s41_s25 = sadd.s32 1, %s2122_s14 }
  0x2d   : > { %p48_p2 = scmp.ne.s32.totalorder %s2122_s14, %s2118_s13  ;;  %p49_p4 = scmp.eq.s32.totalorder %s2134_s17, 0 }
  0x2e   : > { %s2552_s28 = smov (%p34_p1, %s32_s28), 0  ;;  %p2538_p8 = scmp.ne.s32.totalorder %s2532_s21, 0 }
  0x2f   : > { %p2255_p6 = por %p49_p4, %p48_p2  ;;  %s36_s27 = ssub.s32 %s2130_s16, %s2552_s28 }
  0x30   : > { %p2261_p10 = por %p2538_p8, %p48_p2  ;;  %p1804_p12 = scmp.lt.s32.totalorder %s2134_s17, 2 }
  0x31   : > { %p39_p11 = scmp.eq.s32.totalorder %s36_s27, 0  ;;  %s162_s26 = sand.u32 1, %s2122_s14  }
  0x32   : > { %s1446_s4 = sshll.u32 %s162_s26, 9  ;;  %s1557_s6 = sshll.u32 %s2130_s16, 13 }
  0x33   : > { %s2270_s5 = scalar_select %p39_p11, %s2122_s14, %s41_s25  }
  0x34   : > { %s2276_s9 = scalar_lea.hbm %s2523_s0, %s1557_s6  ;;  %s166_s21 = scalar_lea.vmem [#allocation2], %s1446_s4 }
  0x35   : > { %s176_s10 = sshll.u32 %s166_s21, 4  ;;  %p2282_p13 = pnand %p1804_p12, %p2255_p6  ;;  %s2278_s10 = int_to_ptr.vmem [resolvable:$true] %s176_s10 }
  0x36   : > { %s2286_s18 = scalar_lea.sflag [#allocation3], %s162_s26  ;;  %s2018_s19 = scalar_lea.hbm %s2276_s9, 8192 }
  0x37   : > { %p2019_p0 = scmp.ne.s32.totalorder %s2276_s9, %s2018_s19  ;;  %p2020_p3 = pneg %p2282_p13 }
  0x38   : > { %s2023_s29 = scalar_lea.hbm %s2523_s0, 16384  ;;  %p2024_p9 = scmp.lt.u32.totalorder %s2276_s9, %s2523_s0 }
  0x39   : > { %p2021_p5 = pnand %p2020_p3, %p2019_p0  ;;  %p2025_p1 = scmp.lt.u32.totalorder %s2023_s29, %s2018_s19 }
  0x3a   : > { %p2027_p4 = scmp.lt.u32.totalorder %s2018_s19, %s2276_s9 }
  0x3b   : > { %p2022_p7 = pneg %p2021_p5  ;;  %p2026_p2 = por %p2025_p1, %p2024_p9 }
  0x3d   : > { %p2028_p6 = por %p2027_p4, %p2026_p2 }
  0x3f   : > { %p2029_p8 = pnand %p2028_p6, %p2022_p7 }
  0x41   : > { %2032 = shalt.err (!%p2029_p8)
}
  0x42   : > { %s2033_s26 = scalar_lea.vmem %s2278_s10, 8192  ;;  %s2139_s7 = smov [#allocation2]  }
  0x43   : > { %p2034_p12 = scmp.ne.s32.totalorder %s2278_s10, %s2033_s26  ;;  %s2038_s8 = sshll.u32 %s2139_s7, 4  ;;  %s2039_s8 = int_to_ptr.vmem [resolvable:$false] %s2038_s8 }
  0x44   : > { %s2040_s21 = scalar_lea.vmem %s2039_s8, 16384  ;;  %p2041_p5 = scmp.lt.s32.totalorder %s2278_s10, %s2039_s8 }
  0x45   : > { %p2036_p11 = pnand %p2034_p12, %p2020_p3  ;;  %p2042_p9 = scmp.lt.s32.totalorder %s2040_s21, %s2033_s26 }
  0x47   : > { %p2037_p0 = pneg %p2036_p11  ;;  %p2043_p1 = por %p2042_p9, %p2041_p5 }
  0x49   : > { %p2044_p2 = pnand %p2043_p1, %p2037_p0 }
  0x4b   : > { %2047 = shalt.err (!%p2044_p2)
}
  0x4c   : > { %s2140_s19 = smov 256   ;;  %s2141_s25 = smov 16  }
  0x4d   : > { %1798 = dma.hbm_to_vmem [thread:$0]  (!%p2282_p13), %s2276_s9, 8192, %s2278_s10, %s2286_s18, %s2140_s19, %s2140_s19, %s2141_s25  }
  0x4e   : > { %p2541_p3 = scmp.ne.s32.totalorder %s2535_s24, 0 }
  0x4f   : > { %s2317_s27 = sand.u32 (!%p2541_p3), 1, %s2118_s13   ;;  %p2542_p7 = scmp.ne.s32.totalorder (!%p2541_p3), %s2533_s22, 0 }
  0x50   : > { %188 = sbr.rel (%p2541_p3) target bundleno = 482 (0x1e2), region = 32  ;;  %s1451_s29 = sshll.u32 (!%p2541_p3), %s2317_s27, 9 }
  0x51   : > { %s191_s4 = scalar_lea.sflag (!%p2541_p3), [#allocation3], %s2317_s27  ;;  %s2321_s6 = scalar_lea.vmem (!%p2541_p3), [#allocation2], %s1451_s29 }
  0x57   : > { %2101 = dma.done.wait (%p2542_p7), %s191_s4, 8192  }
  0x58   : > { %2103 = vsyncadd (%p2542_p7), %s191_s4, 4294959104  ;;  %p2543_p13 = scmp.ne.s32.totalorder %s2531_s20, 0 }
  0x5a   : > { %2105 = dma.done.wait (%p2543_p13), [#allocation6], 4096  }
  0x5b   : > { %2107 = vsyncadd (%p2543_p13), [#allocation6], 4294963200  ;;  %v1862_v0 = vld [vmem:[#allocation5 + $0x40] sm:$0xff]   ;;  %v1866_v4 = vld [vmem:[#allocation5 + $0x48] sm:$0xff]   ;;  %s1453_s20 = sshll.u32 %s2317_s27, 8  ;;  %s1558_s10 = sshll.u32 %s2126_s15, 12 }
  0x5c   : > { %v1863_v1 = vld [vmem:[#allocation5 + $0xc0] sm:$0xff]   ;;  %1559 = vmatprep.subr.bf16.mxu0 %v1862_v0  ;;  %v1867_v5 = vld [vmem:[#allocation5 + $0xc8] sm:$0xff]   ;;  %v1870_v8 = vld [vmem:[#allocation5 + $0x50] sm:$0xff]   ;;  %s2402_s9 = scalar_lea.vmem [#allocation7], %s1453_s20  ;;  %s2469_s7 = scalar_lea.hbm %s2526_s3, %s1558_s10 }
  0x5d   : > { %v1864_v2 = vld [vmem:[#allocation5] sm:$0xff]   ;;  %1671 = vmatprep.subr.bf16.mxu1 %v1863_v1  ;;  %v1868_v6 = vld [vmem:[#allocation5 + $0x8] sm:$0xff]   ;;  %v1871_v9 = vld [vmem:[#allocation5 + $0xd0] sm:$0xff]   ;;  %s1345_s11 = sshll.u32 %s2402_s9, 4  ;;  %s1332_s8 = scalar_lea.sflag [#allocation4], %s2317_s27  ;;  %s2471_s11 = int_to_ptr.vmem [resolvable:$true] %s1345_s11 }
  0x5e   : > { %v1865_v3 = vld [vmem:[#allocation5 + $0x80] sm:$0xff]   ;;  %1560 = vmatpush3.bf16.msra.mxu0 %v1864_v2  ;;  %v1869_v7 = vld [vmem:[#allocation5 + $0x88] sm:$0xff]   ;;  %v1872_v10 = vld [vmem:[#allocation5 + $0x10] sm:$0xff]   ;;  %s2048_s15 = scalar_lea.vmem %s2471_s11, 4096  ;;  %s2142_s21 = smov [#allocation7]  }
  0x5f   : > { %1672 = vmatpush3.bf16.msra.mxu1 %v1865_v3  ;;  %1561 = vmatprep.subr.bf16.mxu0 %v1866_v4  ;;  %v1873_v11 = vld [vmem:[#allocation5 + $0x90] sm:$0xff]   ;;  %v1874_v12 = vld [vmem:[#allocation5 + $0x58] sm:$0xff]   ;;  %v1878_v16 = vld [vmem:[#allocation5 + $0x60] sm:$0xff]   ;;  %p2049_p4 = scmp.ne.s32.totalorder %s2471_s11, %s2048_s15  ;;  %s2052_s19 = sshll.u32 %s2142_s21, 4  ;;  %s2053_s19 = int_to_ptr.vmem [resolvable:$false] %s2052_s19 }
  0x60   : > { %1673 = vmatprep.subr.bf16.mxu1 %v1867_v5  ;;  %v1875_v13 = vld [vmem:[#allocation5 + $0xd8] sm:$0xff]   ;;  %v1879_v17 = vld [vmem:[#allocation5 + $0xe0] sm:$0xff]   ;;  %v1882_v20 = vld [vmem:[#allocation5 + $0x68] sm:$0xff]   ;;  %s2054_s25 = scalar_lea.vmem %s2053_s19, 8192  ;;  %p2055_p12 = scmp.lt.s32.totalorder %s2471_s11, %s2053_s19 }
  0x61   : > { %v1876_v14 = vld [vmem:[#allocation5 + $0x18] sm:$0xff]   ;;  %v1880_v18 = vld [vmem:[#allocation5 + $0x20] sm:$0xff]   ;;  %v1883_v21 = vld [vmem:[#allocation5 + $0xe8] sm:$0xff]   ;;  %p2050_p6 = pnand %p2049_p4, %p2261_p10  ;;  %p2056_p11 = scmp.lt.s32.totalorder %s2054_s25, %s2048_s15 }
  0x62   : > { %1562 = vmatpush3.bf16.msra.mxu0 %v1868_v6  ;;  %v1877_v15 = vld [vmem:[#allocation5 + $0x98] sm:$0xff]   ;;  %v1881_v19 = vld [vmem:[#allocation5 + $0xa0] sm:$0xff]   ;;  %v1884_v22 = vld [vmem:[#allocation5 + $0x28] sm:$0xff]  }
  0x63   : > { %1674 = vmatpush3.bf16.msra.mxu1 %v1869_v7  ;;  %1563 = vmatprep.subr.bf16.mxu0 %v1870_v8  ;;  %v1885_v23 = vld [vmem:[#allocation5 + $0xa8] sm:$0xff]   ;;  %v1886_v24 = vld [vmem:[#allocation5 + $0x70] sm:$0xff]   ;;  %v1890_v28 = vld [vmem:[#allocation5 + $0x78] sm:$0xff]   ;;  %p2051_p8 = pneg %p2050_p6  ;;  %p2057_p0 = por %p2056_p11, %p2055_p12 }
  0x64   : > { %1675 = vmatprep.subr.bf16.mxu1 %v1871_v9  ;;  %v1887_v25 = vld [vmem:[#allocation5 + $0xf0] sm:$0xff]   ;;  %v1891_v29 = vld [vmem:[#allocation5 + $0xf8] sm:$0xff]  }
  0x65   : > { %v1888_v26 = vld [vmem:[#allocation5 + $0x30] sm:$0xff]   ;;  %v1892_v30 = vld [vmem:[#allocation5 + $0x38] sm:$0xff]   ;;  %p2058_p5 = pnand %p2057_p0, %p2051_p8 }
  0x66   : > { %1564 = vmatpush3.bf16.msra.mxu0 %v1872_v10  ;;  %v1889_v27 = vld [vmem:[#allocation5 + $0xb0] sm:$0xff]   ;;  %v1893_v31 = vld [vmem:[#allocation5 + $0xb8] sm:$0xff]  }
  0x67   : > { %1676 = vmatpush3.bf16.msra.mxu1 %v1873_v11  ;;  %1565 = vmatprep.subr.bf16.mxu0 %v1874_v12  ;;  %v1894_v32 = vld [vmem:[%s2321_s6] ss:$16 sps:$4 sm:$0xff]   ;;  %v1896_v33 = vld [vmem:[%s2321_s6 + $0x4] ss:$16 sps:$4 sm:$0xff]   ;;  %v1897_v34 = vld [vmem:[%s2321_s6 + $0x8] ss:$16 sps:$4 sm:$0xff]  }
  0x68   : > { %1677 = vmatprep.subr.bf16.mxu1 %v1875_v13  ;;  %v1899_v35 = vld [vmem:[%s2321_s6 + $0xc] ss:$16 sps:$4 sm:$0xff]   ;;  %977 = vmatprep.mubr.bf16.mxu0 %v1896_v33  ;;  %v1900_v36 = vld [vmem:[%s2321_s6 + $0x24] ss:$16 sps:$4 sm:$0xff]   ;;  %v1904_v38 = vld [vmem:[%s2321_s6 + $0x20] ss:$16 sps:$4 sm:$0xff]  }
  0x69   : > { %1138 = vmatprep.mubr.bf16.mxu1 %v1899_v35  ;;  %v1902_v37 = vld [vmem:[%s2321_s6 + $0x2c] ss:$16 sps:$4 sm:$0xff]   ;;  %v1905_v39 = vld [vmem:[%s2321_s6 + $0x28] ss:$16 sps:$4 sm:$0xff]   ;;  %v1906_v40 = vld [vmem:[%s2321_s6 + $0x44] ss:$16 sps:$4 sm:$0xff]  }
  0x6a   : > { %1566 = vmatpush3.bf16.msra.mxu0 %v1876_v14  ;;  %v1908_v41 = vld [vmem:[%s2321_s6 + $0x4c] ss:$16 sps:$4 sm:$0xff]   ;;  %v1910_v42 = vld [vmem:[%s2321_s6 + $0x40] ss:$16 sps:$4 sm:$0xff]   ;;  %v1911_v43 = vld [vmem:[%s2321_s6 + $0x48] ss:$16 sps:$4 sm:$0xff]  }
  0x6b   : > { %1678 = vmatpush3.bf16.msra.mxu1 %v1877_v15  ;;  %1567 = vmatprep.subr.bf16.mxu0 %v1878_v16  ;;  %v1912_v44 = vld [vmem:[%s2321_s6 + $0x64] ss:$16 sps:$4 sm:$0xff]   ;;  %v1914_v45 = vld [vmem:[%s2321_s6 + $0x6c] ss:$16 sps:$4 sm:$0xff]   ;;  %v1916_v46 = vld [vmem:[%s2321_s6 + $0x60] ss:$16 sps:$4 sm:$0xff]  }
  0x6c   : > { %1679 = vmatprep.subr.bf16.mxu1 %v1879_v17  ;;  %v1917_v47 = vld [vmem:[%s2321_s6 + $0x68] ss:$16 sps:$4 sm:$0xff]   ;;  %v1918_v48 = vld [vmem:[%s2321_s6 + $0x84] ss:$16 sps:$4 sm:$0xff]   ;;  %v1920_v49 = vld [vmem:[%s2321_s6 + $0x8c] ss:$16 sps:$4 sm:$0xff]  }
  0x6d   : > { %v1922_v50 = vld [vmem:[%s2321_s6 + $0x80] ss:$16 sps:$4 sm:$0xff]   ;;  %v1923_v51 = vld [vmem:[%s2321_s6 + $0x88] ss:$16 sps:$4 sm:$0xff]   ;;  %v1924_v52 = vld [vmem:[%s2321_s6 + $0xa4] ss:$16 sps:$4 sm:$0xff]  }
  0x6e   : > { %1568 = vmatpush3.bf16.msra.mxu0 %v1880_v18  ;;  %v1926_v53 = vld [vmem:[%s2321_s6 + $0xac] ss:$16 sps:$4 sm:$0xff]   ;;  %v1928_v54 = vld [vmem:[%s2321_s6 + $0xa0] ss:$16 sps:$4 sm:$0xff]   ;;  %v1929_v55 = vld [vmem:[%s2321_s6 + $0xa8] ss:$16 sps:$4 sm:$0xff]  }
  0x6f   : > { %1680 = vmatpush3.bf16.msra.mxu1 %v1881_v19  ;;  %1569 = vmatprep.subr.bf16.mxu0 %v1882_v20  ;;  %v1930_v56 = vld [vmem:[%s2321_s6 + $0xc4] ss:$16 sps:$4 sm:$0xff]   ;;  %v1932_v57 = vld [vmem:[%s2321_s6 + $0xcc] ss:$16 sps:$4 sm:$0xff]   ;;  %v1934_v58 = vld [vmem:[%s2321_s6 + $0xc0] ss:$16 sps:$4 sm:$0xff]  }
  0x70   : > { %1681 = vmatprep.subr.bf16.mxu1 %v1883_v21  ;;  %v1935_v59 = vld [vmem:[%s2321_s6 + $0xc8] ss:$16 sps:$4 sm:$0xff]   ;;  %v1936_v60 = vld [vmem:[%s2321_s6 + $0xe4] ss:$16 sps:$4 sm:$0xff]   ;;  %v1938_v61 = vld [vmem:[%s2321_s6 + $0xec] ss:$16 sps:$4 sm:$0xff]  }
  0x71   : > { %v1940_v62 = vld [vmem:[%s2321_s6 + $0xe0] ss:$16 sps:$4 sm:$0xff]   ;;  %v1941_v63 = vld [vmem:[%s2321_s6 + $0xe8] ss:$16 sps:$4 sm:$0xff]   ;;  %v1942_v0 = vld [vmem:[%s2321_s6 + $0x104] ss:$16 sps:$4 sm:$0xff]  }
  0x72   : > { %1570 = vmatpush3.bf16.msra.mxu0 %v1884_v22  ;;  %v1944_v1 = vld [vmem:[%s2321_s6 + $0x10c] ss:$16 sps:$4 sm:$0xff]   ;;  %v1946_v2 = vld [vmem:[%s2321_s6 + $0x100] ss:$16 sps:$4 sm:$0xff]   ;;  %v1947_v3 = vld [vmem:[%s2321_s6 + $0x108] ss:$16 sps:$4 sm:$0xff]  }
  0x73   : > { %1682 = vmatpush3.bf16.msra.mxu1 %v1885_v23  ;;  %1571 = vmatprep.subr.bf16.mxu0 %v1886_v24  ;;  %v1948_v4 = vld [vmem:[%s2321_s6 + $0x124] ss:$16 sps:$4 sm:$0xff]   ;;  %v1950_v5 = vld [vmem:[%s2321_s6 + $0x12c] ss:$16 sps:$4 sm:$0xff]   ;;  %v1952_v6 = vld [vmem:[%s2321_s6 + $0x120] ss:$16 sps:$4 sm:$0xff]  }
  0x74   : > { %1683 = vmatprep.subr.bf16.mxu1 %v1887_v25  ;;  %v1953_v7 = vld [vmem:[%s2321_s6 + $0x128] ss:$16 sps:$4 sm:$0xff]   ;;  %v1954_v8 = vld [vmem:[%s2321_s6 + $0x144] ss:$16 sps:$4 sm:$0xff]   ;;  %v1956_v9 = vld [vmem:[%s2321_s6 + $0x14c] ss:$16 sps:$4 sm:$0xff]  }
  0x75   : > { %v1958_v10 = vld [vmem:[%s2321_s6 + $0x140] ss:$16 sps:$4 sm:$0xff]   ;;  %v1959_v11 = vld [vmem:[%s2321_s6 + $0x148] ss:$16 sps:$4 sm:$0xff]   ;;  %v1960_v12 = vld [vmem:[%s2321_s6 + $0x164] ss:$16 sps:$4 sm:$0xff]  }
  0x76   : > { %1572 = vmatpush3.bf16.msra.mxu0 %v1888_v26  ;;  %v1962_v13 = vld [vmem:[%s2321_s6 + $0x16c] ss:$16 sps:$4 sm:$0xff]   ;;  %v1964_v14 = vld [vmem:[%s2321_s6 + $0x160] ss:$16 sps:$4 sm:$0xff]   ;;  %v1965_v15 = vld [vmem:[%s2321_s6 + $0x168] ss:$16 sps:$4 sm:$0xff]  }
  0x77   : > { %1684 = vmatpush3.bf16.msra.mxu1 %v1889_v27  ;;  %1573 = vmatprep.subr.bf16.mxu0 %v1890_v28  ;;  %v1966_v16 = vld [vmem:[%s2321_s6 + $0x184] ss:$16 sps:$4 sm:$0xff]   ;;  %v1968_v17 = vld [vmem:[%s2321_s6 + $0x18c] ss:$16 sps:$4 sm:$0xff]   ;;  %v1970_v18 = vld [vmem:[%s2321_s6 + $0x180] ss:$16 sps:$4 sm:$0xff]  }
  0x78   : > { %1685 = vmatprep.subr.bf16.mxu1 %v1891_v29  ;;  %v1971_v19 = vld [vmem:[%s2321_s6 + $0x188] ss:$16 sps:$4 sm:$0xff]   ;;  %v1972_v20 = vld [vmem:[%s2321_s6 + $0x1a4] ss:$16 sps:$4 sm:$0xff]   ;;  %v1974_v21 = vld [vmem:[%s2321_s6 + $0x1ac] ss:$16 sps:$4 sm:$0xff]  }
  0x79   : > { %v1976_v22 = vld [vmem:[%s2321_s6 + $0x1a0] ss:$16 sps:$4 sm:$0xff]   ;;  %v1977_v23 = vld [vmem:[%s2321_s6 + $0x1a8] ss:$16 sps:$4 sm:$0xff]   ;;  %v1978_v24 = vld [vmem:[%s2321_s6 + $0x1c4] ss:$16 sps:$4 sm:$0xff]  }
  0x7a   : > { %1574 = vmatpush3.bf16.msra.mxu0 %v1892_v30  ;;  %v1980_v25 = vld [vmem:[%s2321_s6 + $0x1cc] ss:$16 sps:$4 sm:$0xff]   ;;  %v1982_v26 = vld [vmem:[%s2321_s6 + $0x1c0] ss:$16 sps:$4 sm:$0xff]   ;;  %v1983_v27 = vld [vmem:[%s2321_s6 + $0x1c8] ss:$16 sps:$4 sm:$0xff]  }
  0x7b   : > { %1686 = vmatpush3.bf16.msra.mxu1 %v1893_v31  ;;  %v1984_v28 = vld [vmem:[%s2321_s6 + $0x1e4] ss:$16 sps:$4 sm:$0xff]   ;;  %v1986_v29 = vld [vmem:[%s2321_s6 + $0x1ec] ss:$16 sps:$4 sm:$0xff]   ;;  %v1988_v30 = vld [vmem:[%s2321_s6 + $0x1e0] ss:$16 sps:$4 sm:$0xff]  }
  0x7c   : > { %v1989_v31 = vld [vmem:[%s2321_s6 + $0x1e8] ss:$16 sps:$4 sm:$0xff]  }
  0x7d   : > { %978 = vmatmul.mubr.bf16.vlgmr.msra.gmra.mrb[0].mxu0 %v1894_v32 }
  0x7e   : > { %1139 = vmatmul.mubr.bf16.vlgmr.msra.gmra.mrb[0].mxu1 %v1897_v34  ;;  %985 = vmatprep.mubr.bf16.mxu0 %v1900_v36 }
  0x7f   : > { %1146 = vmatprep.mubr.bf16.mxu1 %v1902_v37 }
  0x85   : > { %986 = vmatmul.mubr.bf16.gmra.mrb[4].mxu0 %v1904_v38 }
  0x86   : > { %1147 = vmatmul.mubr.bf16.gmra.mrb[4].mxu1 %v1905_v39  ;;  %993 = vmatprep.mubr.bf16.mxu0 %v1906_v40 }
  0x87   : > { %1154 = vmatprep.mubr.bf16.mxu1 %v1908_v41  ;;  %v2399_v41 = vld [vmem:[%s2525_s2] ss:$0 sm:$0xff] }
  0x8d   : > { %994 = vmatmul.mubr.bf16.gmra.mrb[8].mxu0 %v1910_v42 }
  0x8e   : > { %1155 = vmatmul.mubr.bf16.gmra.mrb[8].mxu1 %v1911_v43  ;;  %1001 = vmatprep.mubr.bf16.mxu0 %v1912_v44 }
  0x8f   : > { %1162 = vmatprep.mubr.bf16.mxu1 %v1914_v45 }
  0x95   : > { %1002 = vmatmul.mubr.bf16.gmra.mrb[12].mxu0 %v1916_v46 }
  0x96   : > { %1163 = vmatmul.mubr.bf16.gmra.mrb[12].mxu1 %v1917_v47  ;;  %1009 = vmatprep.mubr.bf16.mxu0 %v1918_v48 }
  0x97   : > { %1170 = vmatprep.mubr.bf16.mxu1 %v1920_v49 }
  0x9d   : > { %1010 = vmatmul.mubr.bf16.gmra.mrb[16].mxu0 %v1922_v50 }
  0x9e   : > { %1171 = vmatmul.mubr.bf16.gmra.mrb[16].mxu1 %v1923_v51  ;;  %1017 = vmatprep.mubr.bf16.mxu0 %v1924_v52 }
  0x9f   : > { %1178 = vmatprep.mubr.bf16.mxu1 %v1926_v53 }
  0xa5   : > { %1018 = vmatmul.mubr.bf16.gmra.mrb[20].mxu0 %v1928_v54 }
  0xa6   : > { %1179 = vmatmul.mubr.bf16.gmra.mrb[20].mxu1 %v1929_v55  ;;  %1025 = vmatprep.mubr.bf16.mxu0 %v1930_v56 }
  0xa7   : > { %1186 = vmatprep.mubr.bf16.mxu1 %v1932_v57 }
  0xad   : > { %1026 = vmatmul.mubr.bf16.gmra.mrb[24].mxu0 %v1934_v58 }
  0xae   : > { %1187 = vmatmul.mubr.bf16.gmra.mrb[24].mxu1 %v1935_v59  ;;  %1033 = vmatprep.mubr.bf16.mxu0 %v1936_v60 }
  0xaf   : > { %1194 = vmatprep.mubr.bf16.mxu1 %v1938_v61 }
  0xb5   : > { %1034 = vmatmul.mubr.bf16.gmra.mrb[28].mxu0 %v1940_v62 }
  0xb6   : > { %1195 = vmatmul.mubr.bf16.gmra.mrb[28].mxu1 %v1941_v63  ;;  %1041 = vmatprep.mubr.bf16.mxu0 %v1942_v0 }
  0xb7   : > { %1202 = vmatprep.mubr.bf16.mxu1 %v1944_v1 }
  0xbd   : > { %1042 = vmatmul.mubr.bf16.gmra.mrb[32].mxu0 %v1946_v2 }
  0xbe   : > { %1203 = vmatmul.mubr.bf16.gmra.mrb[32].mxu1 %v1947_v3  ;;  %1049 = vmatprep.mubr.bf16.mxu0 %v1948_v4 }
  0xbf   : > { %1210 = vmatprep.mubr.bf16.mxu1 %v1950_v5 }
  0xc5   : > { %1050 = vmatmul.mubr.bf16.gmra.mrb[36].mxu0 %v1952_v6 }
  0xc6   : > { %1211 = vmatmul.mubr.bf16.gmra.mrb[36].mxu1 %v1953_v7  ;;  %1057 = vmatprep.mubr.bf16.mxu0 %v1954_v8 }
  0xc7   : > { %1218 = vmatprep.mubr.bf16.mxu1 %v1956_v9 }
  0xcd   : > { %1058 = vmatmul.mubr.bf16.gmra.mrb[40].mxu0 %v1958_v10 }
  0xce   : > { %1219 = vmatmul.mubr.bf16.gmra.mrb[40].mxu1 %v1959_v11  ;;  %1065 = vmatprep.mubr.bf16.mxu0 %v1960_v12 }
  0xcf   : > { %1226 = vmatprep.mubr.bf16.mxu1 %v1962_v13 }
  0xd5   : > { %1066 = vmatmul.mubr.bf16.gmra.mrb[44].mxu0 %v1964_v14 }
  0xd6   : > { %1227 = vmatmul.mubr.bf16.gmra.mrb[44].mxu1 %v1965_v15  ;;  %1073 = vmatprep.mubr.bf16.mxu0 %v1966_v16 }
  0xd7   : > { %1234 = vmatprep.mubr.bf16.mxu1 %v1968_v17 }
  0xdd   : > { %1074 = vmatmul.mubr.bf16.gmra.mrb[48].mxu0 %v1970_v18 }
  0xde   : > { %1235 = vmatmul.mubr.bf16.gmra.mrb[48].mxu1 %v1971_v19  ;;  %1081 = vmatprep.mubr.bf16.mxu0 %v1972_v20 }
  0xdf   : > { %1242 = vmatprep.mubr.bf16.mxu1 %v1974_v21 }
  0xe5   : > { %1082 = vmatmul.mubr.bf16.gmra.mrb[52].mxu0 %v1976_v22 }
  0xe6   : > { %1243 = vmatmul.mubr.bf16.gmra.mrb[52].mxu1 %v1977_v23  ;;  %1089 = vmatprep.mubr.bf16.mxu0 %v1978_v24 }
  0xe7   : > { %1250 = vmatprep.mubr.bf16.mxu1 %v1980_v25 }
  0xed   : > { %1090 = vmatmul.mubr.bf16.gmra.mrb[56].mxu0 %v1982_v26 }
  0xee   : > { %1251 = vmatmul.mubr.bf16.gmra.mrb[56].mxu1 %v1983_v27  ;;  %1097 = vmatprep.mubr.bf16.mxu0 %v1984_v28 }
  0xef   : > { %1258 = vmatprep.mubr.bf16.mxu1 %v1986_v29 }
  0xf5   : > { %1098 = vmatmul.mubr.bf16.gmra.mrb[60].mxu0 %v1988_v30 }
  0xf6   : > { %1259 = vmatmul.mubr.bf16.gmra.mrb[60].mxu1 %v1989_v31 }
 0x150   : > { %v1575_v32 = vpop.f32.mrb[0].mxu0 }
 0x151   : > { %v1687_v33 = vpop.f32.mrb[0].mxu1  ;;  %v1576_v34 = vpop.f32.mrb[1].mxu0 }
 0x152   : > { %v1577_v35 = vadd.f32 %v1576_v34, %v1575_v32  ;;  %v1688_v36 = vpop.f32.mrb[1].mxu1  ;;  %v1578_v37 = vpop.f32.mrb[2].mxu0 }
 0x153   : > { %v1689_v38 = vadd.f32 %v1688_v36, %v1687_v33  ;;  %v1690_v39 = vpop.f32.mrb[2].mxu1  ;;  %v1579_v40 = vpop.f32.mrb[3].mxu0 }
 0x154   : > { %v1580_v42 = vadd.f32 %v1579_v40, %v1578_v37  ;;  %v1691_v43 = vpop.f32.mrb[3].mxu1 }
 0x155   : > { %v1141_v44 = vadd.f32 %v1689_v38, %v1577_v35  ;;  %v1692_v45 = vadd.f32 %v1691_v43, %v1690_v39 }
 0x157   : > { %v1267_v46 = vadd.f32 %v2399_v41, %v1141_v44  ;;  %v1144_v47 = vadd.f32 %v1692_v45, %v1580_v42 }
 0x158   : > { %v1581_v48 = vpop.f32.mrb[4].mxu0 }
 0x159   : > { %1299 = vst [vmem:[%s2402_s9] sm:$0xff] %v1267_v46  ;;  %v1268_v49 = vadd.f32 %v2399_v41, %v1144_v47  ;;  %v1693_v50 = vpop.f32.mrb[4].mxu1  ;;  %v1582_v51 = vpop.f32.mrb[5].mxu0 }
 0x15a   : > { %v1583_v52 = vadd.f32 %v1582_v51, %v1581_v48  ;;  %v1694_v53 = vpop.f32.mrb[5].mxu1  ;;  %v1584_v54 = vpop.f32.mrb[6].mxu0 }
 0x15b   : > { %1300 = vst [vmem:[%s2402_s9 + $0x8] sm:$0xff] %v1268_v49  ;;  %v1695_v55 = vadd.f32 %v1694_v53, %v1693_v50  ;;  %v1696_v56 = vpop.f32.mrb[6].mxu1  ;;  %v1585_v57 = vpop.f32.mrb[7].mxu0 }
 0x15c   : > { %v1586_v58 = vadd.f32 %v1585_v57, %v1584_v54  ;;  %v1697_v59 = vpop.f32.mrb[7].mxu1 }
 0x15d   : > { %v1149_v60 = vadd.f32 %v1695_v55, %v1583_v52  ;;  %v1698_v61 = vadd.f32 %v1697_v59, %v1696_v56 }
 0x15f   : > { %v1269_v62 = vadd.f32 %v2399_v41, %v1149_v60  ;;  %v1152_v63 = vadd.f32 %v1698_v61, %v1586_v58 }
 0x160   : > { %v1587_v0 = vpop.f32.mrb[8].mxu0 }
 0x161   : > { %1301 = vst [vmem:[%s2402_s9 + $0x10] sm:$0xff] %v1269_v62  ;;  %v1270_v1 = vadd.f32 %v2399_v41, %v1152_v63  ;;  %v1699_v2 = vpop.f32.mrb[8].mxu1  ;;  %v1588_v3 = vpop.f32.mrb[9].mxu0 }
 0x162   : > { %v1589_v4 = vadd.f32 %v1588_v3, %v1587_v0  ;;  %v1700_v5 = vpop.f32.mrb[9].mxu1  ;;  %v1590_v6 = vpop.f32.mrb[10].mxu0 }
 0x163   : > { %1302 = vst [vmem:[%s2402_s9 + $0x18] sm:$0xff] %v1270_v1  ;;  %v1701_v7 = vadd.f32 %v1700_v5, %v1699_v2  ;;  %v1702_v8 = vpop.f32.mrb[10].mxu1  ;;  %v1591_v9 = vpop.f32.mrb[11].mxu0 }
 0x164   : > { %v1592_v10 = vadd.f32 %v1591_v9, %v1590_v6  ;;  %v1703_v11 = vpop.f32.mrb[11].mxu1 }
 0x165   : > { %v1157_v12 = vadd.f32 %v1701_v7, %v1589_v4  ;;  %v1704_v13 = vadd.f32 %v1703_v11, %v1702_v8 }
 0x167   : > { %v1271_v14 = vadd.f32 %v2399_v41, %v1157_v12  ;;  %v1160_v15 = vadd.f32 %v1704_v13, %v1592_v10 }
 0x168   : > { %v1593_v16 = vpop.f32.mrb[12].mxu0 }
 0x169   : > { %1303 = vst [vmem:[%s2402_s9 + $0x20] sm:$0xff] %v1271_v14  ;;  %v1272_v17 = vadd.f32 %v2399_v41, %v1160_v15  ;;  %v1705_v18 = vpop.f32.mrb[12].mxu1  ;;  %v1594_v19 = vpop.f32.mrb[13].mxu0 }
 0x16a   : > { %v1595_v20 = vadd.f32 %v1594_v19, %v1593_v16  ;;  %v1706_v21 = vpop.f32.mrb[13].mxu1  ;;  %v1596_v22 = vpop.f32.mrb[14].mxu0 }
 0x16b   : > { %1304 = vst [vmem:[%s2402_s9 + $0x28] sm:$0xff] %v1272_v17  ;;  %v1707_v23 = vadd.f32 %v1706_v21, %v1705_v18  ;;  %v1708_v24 = vpop.f32.mrb[14].mxu1  ;;  %v1597_v25 = vpop.f32.mrb[15].mxu0 }
 0x16c   : > { %v1598_v26 = vadd.f32 %v1597_v25, %v1596_v22  ;;  %v1709_v27 = vpop.f32.mrb[15].mxu1 }
 0x16d   : > { %v1165_v28 = vadd.f32 %v1707_v23, %v1595_v20  ;;  %v1710_v29 = vadd.f32 %v1709_v27, %v1708_v24 }
 0x16f   : > { %v1273_v30 = vadd.f32 %v2399_v41, %v1165_v28  ;;  %v1168_v31 = vadd.f32 %v1710_v29, %v1598_v26 }
 0x170   : > { %v1599_v32 = vpop.f32.mrb[16].mxu0 }
 0x171   : > { %1305 = vst [vmem:[%s2402_s9 + $0x30] sm:$0xff] %v1273_v30  ;;  %v1274_v33 = vadd.f32 %v2399_v41, %v1168_v31  ;;  %v1711_v34 = vpop.f32.mrb[16].mxu1  ;;  %v1600_v35 = vpop.f32.mrb[17].mxu0 }
 0x172   : > { %v1601_v36 = vadd.f32 %v1600_v35, %v1599_v32  ;;  %v1712_v37 = vpop.f32.mrb[17].mxu1  ;;  %v1602_v38 = vpop.f32.mrb[18].mxu0 }
 0x173   : > { %1306 = vst [vmem:[%s2402_s9 + $0x38] sm:$0xff] %v1274_v33  ;;  %v1713_v39 = vadd.f32 %v1712_v37, %v1711_v34  ;;  %v1714_v40 = vpop.f32.mrb[18].mxu1  ;;  %v1603_v42 = vpop.f32.mrb[19].mxu0 }
 0x174   : > { %v1604_v43 = vadd.f32 %v1603_v42, %v1602_v38  ;;  %v1715_v44 = vpop.f32.mrb[19].mxu1 }
 0x175   : > { %v1173_v45 = vadd.f32 %v1713_v39, %v1601_v36  ;;  %v1716_v46 = vadd.f32 %v1715_v44, %v1714_v40 }
 0x177   : > { %v1275_v47 = vadd.f32 %v2399_v41, %v1173_v45  ;;  %v1176_v48 = vadd.f32 %v1716_v46, %v1604_v43 }
 0x178   : > { %v1605_v49 = vpop.f32.mrb[20].mxu0 }
 0x179   : > { %1307 = vst [vmem:[%s2402_s9 + $0x40] sm:$0xff] %v1275_v47  ;;  %v1276_v50 = vadd.f32 %v2399_v41, %v1176_v48  ;;  %v1717_v51 = vpop.f32.mrb[20].mxu1  ;;  %v1606_v52 = vpop.f32.mrb[21].mxu0 }
 0x17a   : > { %v1607_v53 = vadd.f32 %v1606_v52, %v1605_v49  ;;  %v1718_v54 = vpop.f32.mrb[21].mxu1  ;;  %v1608_v55 = vpop.f32.mrb[22].mxu0 }
 0x17b   : > { %1308 = vst [vmem:[%s2402_s9 + $0x48] sm:$0xff] %v1276_v50  ;;  %v1719_v56 = vadd.f32 %v1718_v54, %v1717_v51  ;;  %v1720_v57 = vpop.f32.mrb[22].mxu1  ;;  %v1609_v58 = vpop.f32.mrb[23].mxu0 }
 0x17c   : > { %v1610_v59 = vadd.f32 %v1609_v58, %v1608_v55  ;;  %v1721_v60 = vpop.f32.mrb[23].mxu1 }
 0x17d   : > { %v1181_v61 = vadd.f32 %v1719_v56, %v1607_v53  ;;  %v1722_v62 = vadd.f32 %v1721_v60, %v1720_v57 }
 0x17f   : > { %v1277_v63 = vadd.f32 %v2399_v41, %v1181_v61  ;;  %v1184_v0 = vadd.f32 %v1722_v62, %v1610_v59 }
 0x180   : > { %v1611_v1 = vpop.f32.mrb[24].mxu0 }
 0x181   : > { %1309 = vst [vmem:[%s2402_s9 + $0x50] sm:$0xff] %v1277_v63  ;;  %v1278_v2 = vadd.f32 %v2399_v41, %v1184_v0  ;;  %v1723_v3 = vpop.f32.mrb[24].mxu1  ;;  %v1612_v4 = vpop.f32.mrb[25].mxu0 }
 0x182   : > { %v1613_v5 = vadd.f32 %v1612_v4, %v1611_v1  ;;  %v1724_v6 = vpop.f32.mrb[25].mxu1  ;;  %v1614_v7 = vpop.f32.mrb[26].mxu0 }
 0x183   : > { %1310 = vst [vmem:[%s2402_s9 + $0x58] sm:$0xff] %v1278_v2  ;;  %v1725_v8 = vadd.f32 %v1724_v6, %v1723_v3  ;;  %v1726_v9 = vpop.f32.mrb[26].mxu1  ;;  %v1615_v10 = vpop.f32.mrb[27].mxu0 }
 0x184   : > { %v1616_v11 = vadd.f32 %v1615_v10, %v1614_v7  ;;  %v1727_v12 = vpop.f32.mrb[27].mxu1 }
 0x185   : > { %v1189_v13 = vadd.f32 %v1725_v8, %v1613_v5  ;;  %v1728_v14 = vadd.f32 %v1727_v12, %v1726_v9 }
 0x187   : > { %v1279_v15 = vadd.f32 %v2399_v41, %v1189_v13  ;;  %v1192_v16 = vadd.f32 %v1728_v14, %v1616_v11 }
 0x188   : > { %v1617_v17 = vpop.f32.mrb[28].mxu0 }
 0x189   : > { %1311 = vst [vmem:[%s2402_s9 + $0x60] sm:$0xff] %v1279_v15  ;;  %v1280_v18 = vadd.f32 %v2399_v41, %v1192_v16  ;;  %v1729_v19 = vpop.f32.mrb[28].mxu1  ;;  %v1618_v20 = vpop.f32.mrb[29].mxu0 }
 0x18a   : > { %v1619_v21 = vadd.f32 %v1618_v20, %v1617_v17  ;;  %v1730_v22 = vpop.f32.mrb[29].mxu1  ;;  %v1620_v23 = vpop.f32.mrb[30].mxu0 }
 0x18b   : > { %1312 = vst [vmem:[%s2402_s9 + $0x68] sm:$0xff] %v1280_v18  ;;  %v1731_v24 = vadd.f32 %v1730_v22, %v1729_v19  ;;  %v1732_v25 = vpop.f32.mrb[30].mxu1  ;;  %v1621_v26 = vpop.f32.mrb[31].mxu0 }
 0x18c   : > { %v1622_v27 = vadd.f32 %v1621_v26, %v1620_v23  ;;  %v1733_v28 = vpop.f32.mrb[31].mxu1 }
 0x18d   : > { %v1197_v29 = vadd.f32 %v1731_v24, %v1619_v21  ;;  %v1734_v30 = vadd.f32 %v1733_v28, %v1732_v25 }
 0x18f   : > { %v1281_v31 = vadd.f32 %v2399_v41, %v1197_v29  ;;  %v1200_v32 = vadd.f32 %v1734_v30, %v1622_v27 }
 0x190   : > { %v1623_v33 = vpop.f32.mrb[32].mxu0 }
 0x191   : > { %1313 = vst [vmem:[%s2402_s9 + $0x70] sm:$0xff] %v1281_v31  ;;  %v1282_v34 = vadd.f32 %v2399_v41, %v1200_v32  ;;  %v1735_v35 = vpop.f32.mrb[32].mxu1  ;;  %v1624_v36 = vpop.f32.mrb[33].mxu0 }
 0x192   : > { %v1625_v37 = vadd.f32 %v1624_v36, %v1623_v33  ;;  %v1736_v38 = vpop.f32.mrb[33].mxu1  ;;  %v1626_v39 = vpop.f32.mrb[34].mxu0 }
 0x193   : > { %1314 = vst [vmem:[%s2402_s9 + $0x78] sm:$0xff] %v1282_v34  ;;  %v1737_v40 = vadd.f32 %v1736_v38, %v1735_v35  ;;  %v1738_v42 = vpop.f32.mrb[34].mxu1  ;;  %v1627_v43 = vpop.f32.mrb[35].mxu0 }
 0x194   : > { %v1628_v44 = vadd.f32 %v1627_v43, %v1626_v39  ;;  %v1739_v45 = vpop.f32.mrb[35].mxu1 }
 0x195   : > { %v1205_v46 = vadd.f32 %v1737_v40, %v1625_v37  ;;  %v1740_v47 = vadd.f32 %v1739_v45, %v1738_v42 }
 0x197   : > { %v1283_v48 = vadd.f32 %v2399_v41, %v1205_v46  ;;  %v1208_v49 = vadd.f32 %v1740_v47, %v1628_v44 }
 0x198   : > { %v1629_v50 = vpop.f32.mrb[36].mxu0 }
 0x199   : > { %1315 = vst [vmem:[%s2402_s9 + $0x80] sm:$0xff] %v1283_v48  ;;  %v1284_v51 = vadd.f32 %v2399_v41, %v1208_v49  ;;  %v1741_v52 = vpop.f32.mrb[36].mxu1  ;;  %v1630_v53 = vpop.f32.mrb[37].mxu0 }
 0x19a   : > { %v1631_v54 = vadd.f32 %v1630_v53, %v1629_v50  ;;  %v1742_v55 = vpop.f32.mrb[37].mxu1  ;;  %v1632_v56 = vpop.f32.mrb[38].mxu0 }
 0x19b   : > { %1316 = vst [vmem:[%s2402_s9 + $0x88] sm:$0xff] %v1284_v51  ;;  %v1743_v57 = vadd.f32 %v1742_v55, %v1741_v52  ;;  %v1744_v58 = vpop.f32.mrb[38].mxu1  ;;  %v1633_v59 = vpop.f32.mrb[39].mxu0 }
 0x19c   : > { %v1634_v60 = vadd.f32 %v1633_v59, %v1632_v56  ;;  %v1745_v61 = vpop.f32.mrb[39].mxu1 }
 0x19d   : > { %v1213_v62 = vadd.f32 %v1743_v57, %v1631_v54  ;;  %v1746_v63 = vadd.f32 %v1745_v61, %v1744_v58 }
 0x19f   : > { %v1285_v0 = vadd.f32 %v2399_v41, %v1213_v62  ;;  %v1216_v1 = vadd.f32 %v1746_v63, %v1634_v60 }
 0x1a0   : > { %v1635_v2 = vpop.f32.mrb[40].mxu0 }
 0x1a1   : > { %1317 = vst [vmem:[%s2402_s9 + $0x90] sm:$0xff] %v1285_v0  ;;  %v1286_v3 = vadd.f32 %v2399_v41, %v1216_v1  ;;  %v1747_v4 = vpop.f32.mrb[40].mxu1  ;;  %v1636_v5 = vpop.f32.mrb[41].mxu0 }
 0x1a2   : > { %v1637_v6 = vadd.f32 %v1636_v5, %v1635_v2  ;;  %v1748_v7 = vpop.f32.mrb[41].mxu1  ;;  %v1638_v8 = vpop.f32.mrb[42].mxu0 }
 0x1a3   : > { %1318 = vst [vmem:[%s2402_s9 + $0x98] sm:$0xff] %v1286_v3  ;;  %v1749_v9 = vadd.f32 %v1748_v7, %v1747_v4  ;;  %v1750_v10 = vpop.f32.mrb[42].mxu1  ;;  %v1639_v11 = vpop.f32.mrb[43].mxu0 }
 0x1a4   : > { %v1640_v12 = vadd.f32 %v1639_v11, %v1638_v8  ;;  %v1751_v13 = vpop.f32.mrb[43].mxu1 }
 0x1a5   : > { %v1221_v14 = vadd.f32 %v1749_v9, %v1637_v6  ;;  %v1752_v15 = vadd.f32 %v1751_v13, %v1750_v10 }
 0x1a7   : > { %v1287_v16 = vadd.f32 %v2399_v41, %v1221_v14  ;;  %v1224_v17 = vadd.f32 %v1752_v15, %v1640_v12 }
 0x1a8   : > { %v1641_v18 = vpop.f32.mrb[44].mxu0 }
 0x1a9   : > { %1319 = vst [vmem:[%s2402_s9 + $0xa0] sm:$0xff] %v1287_v16  ;;  %v1288_v19 = vadd.f32 %v2399_v41, %v1224_v17  ;;  %v1753_v20 = vpop.f32.mrb[44].mxu1  ;;  %v1642_v21 = vpop.f32.mrb[45].mxu0 }
 0x1aa   : > { %v1643_v22 = vadd.f32 %v1642_v21, %v1641_v18  ;;  %v1754_v23 = vpop.f32.mrb[45].mxu1  ;;  %v1644_v24 = vpop.f32.mrb[46].mxu0 }
 0x1ab   : > { %1320 = vst [vmem:[%s2402_s9 + $0xa8] sm:$0xff] %v1288_v19  ;;  %v1755_v25 = vadd.f32 %v1754_v23, %v1753_v20  ;;  %v1756_v26 = vpop.f32.mrb[46].mxu1  ;;  %v1645_v27 = vpop.f32.mrb[47].mxu0 }
 0x1ac   : > { %v1646_v28 = vadd.f32 %v1645_v27, %v1644_v24  ;;  %v1757_v29 = vpop.f32.mrb[47].mxu1 }
 0x1ad   : > { %v1229_v30 = vadd.f32 %v1755_v25, %v1643_v22  ;;  %v1758_v31 = vadd.f32 %v1757_v29, %v1756_v26 }
 0x1af   : > { %v1289_v32 = vadd.f32 %v2399_v41, %v1229_v30  ;;  %v1232_v33 = vadd.f32 %v1758_v31, %v1646_v28 }
 0x1b0   : > { %v1647_v34 = vpop.f32.mrb[48].mxu0 }
 0x1b1   : > { %1321 = vst [vmem:[%s2402_s9 + $0xb0] sm:$0xff] %v1289_v32  ;;  %v1290_v35 = vadd.f32 %v2399_v41, %v1232_v33  ;;  %v1759_v36 = vpop.f32.mrb[48].mxu1  ;;  %v1648_v37 = vpop.f32.mrb[49].mxu0 }
 0x1b2   : > { %v1649_v38 = vadd.f32 %v1648_v37, %v1647_v34  ;;  %v1760_v39 = vpop.f32.mrb[49].mxu1  ;;  %v1650_v40 = vpop.f32.mrb[50].mxu0 }
 0x1b3   : > { %1322 = vst [vmem:[%s2402_s9 + $0xb8] sm:$0xff] %v1290_v35  ;;  %v1761_v42 = vadd.f32 %v1760_v39, %v1759_v36  ;;  %v1762_v43 = vpop.f32.mrb[50].mxu1  ;;  %v1651_v44 = vpop.f32.mrb[51].mxu0 }
 0x1b4   : > { %v1652_v45 = vadd.f32 %v1651_v44, %v1650_v40  ;;  %v1763_v46 = vpop.f32.mrb[51].mxu1 }
 0x1b5   : > { %v1237_v47 = vadd.f32 %v1761_v42, %v1649_v38  ;;  %v1764_v48 = vadd.f32 %v1763_v46, %v1762_v43 }
 0x1b7   : > { %v1291_v49 = vadd.f32 %v2399_v41, %v1237_v47  ;;  %v1240_v50 = vadd.f32 %v1764_v48, %v1652_v45 }
 0x1b8   : > { %v1653_v51 = vpop.f32.mrb[52].mxu0 }
 0x1b9   : > { %1323 = vst [vmem:[%s2402_s9 + $0xc0] sm:$0xff] %v1291_v49  ;;  %v1292_v52 = vadd.f32 %v2399_v41, %v1240_v50  ;;  %v1765_v53 = vpop.f32.mrb[52].mxu1  ;;  %v1654_v54 = vpop.f32.mrb[53].mxu0 }
 0x1ba   : > { %v1655_v55 = vadd.f32 %v1654_v54, %v1653_v51  ;;  %v1766_v56 = vpop.f32.mrb[53].mxu1  ;;  %v1656_v57 = vpop.f32.mrb[54].mxu0 }
 0x1bb   : > { %1324 = vst [vmem:[%s2402_s9 + $0xc8] sm:$0xff] %v1292_v52  ;;  %v1767_v58 = vadd.f32 %v1766_v56, %v1765_v53  ;;  %v1768_v59 = vpop.f32.mrb[54].mxu1  ;;  %v1657_v60 = vpop.f32.mrb[55].mxu0 }
 0x1bc   : > { %v1658_v61 = vadd.f32 %v1657_v60, %v1656_v57  ;;  %v1769_v62 = vpop.f32.mrb[55].mxu1 }
 0x1bd   : > { %v1245_v63 = vadd.f32 %v1767_v58, %v1655_v55  ;;  %v1770_v0 = vadd.f32 %v1769_v62, %v1768_v59 }
 0x1bf   : > { %v1293_v1 = vadd.f32 %v2399_v41, %v1245_v63  ;;  %v1248_v2 = vadd.f32 %v1770_v0, %v1658_v61 }
 0x1c0   : > { %v1659_v3 = vpop.f32.mrb[56].mxu0 }
 0x1c1   : > { %1325 = vst [vmem:[%s2402_s9 + $0xd0] sm:$0xff] %v1293_v1  ;;  %v1294_v4 = vadd.f32 %v2399_v41, %v1248_v2  ;;  %v1771_v5 = vpop.f32.mrb[56].mxu1  ;;  %v1660_v6 = vpop.f32.mrb[57].mxu0 }
 0x1c2   : > { %v1661_v7 = vadd.f32 %v1660_v6, %v1659_v3  ;;  %v1772_v8 = vpop.f32.mrb[57].mxu1  ;;  %v1662_v9 = vpop.f32.mrb[58].mxu0 }
 0x1c3   : > { %1326 = vst [vmem:[%s2402_s9 + $0xd8] sm:$0xff] %v1294_v4  ;;  %v1773_v10 = vadd.f32 %v1772_v8, %v1771_v5  ;;  %v1774_v11 = vpop.f32.mrb[58].mxu1  ;;  %v1663_v12 = vpop.f32.mrb[59].mxu0 }
 0x1c4   : > { %v1664_v13 = vadd.f32 %v1663_v12, %v1662_v9  ;;  %v1775_v14 = vpop.f32.mrb[59].mxu1 }
 0x1c5   : > { %v1253_v15 = vadd.f32 %v1773_v10, %v1661_v7  ;;  %v1776_v16 = vadd.f32 %v1775_v14, %v1774_v11 }
 0x1c7   : > { %v1295_v17 = vadd.f32 %v2399_v41, %v1253_v15  ;;  %v1256_v18 = vadd.f32 %v1776_v16, %v1664_v13 }
 0x1c8   : > { %v1665_v19 = vpop.f32.mrb[60].mxu0 }
 0x1c9   : > { %1327 = vst [vmem:[%s2402_s9 + $0xe0] sm:$0xff] %v1295_v17  ;;  %v1296_v20 = vadd.f32 %v2399_v41, %v1256_v18  ;;  %v1777_v21 = vpop.f32.mrb[60].mxu1  ;;  %v1666_v22 = vpop.f32.mrb[61].mxu0 }
 0x1ca   : > { %v1667_v23 = vadd.f32 %v1666_v22, %v1665_v19  ;;  %v1778_v24 = vpop.f32.mrb[61].mxu1  ;;  %v1668_v25 = vpop.f32.mrb[62].mxu0 }
 0x1cb   : > { %1328 = vst [vmem:[%s2402_s9 + $0xe8] sm:$0xff] %v1296_v20  ;;  %v1779_v26 = vadd.f32 %v1778_v24, %v1777_v21  ;;  %v1780_v27 = vpop.f32.mrb[62].mxu1  ;;  %v1669_v28 = vpop.f32.mrb[63].mxu0 }
 0x1cc   : > { %v1670_v29 = vadd.f32 %v1669_v28, %v1668_v25  ;;  %v1781_v30 = vpop.f32.mrb[63].mxu1 }
 0x1cd   : > { %v1261_v31 = vadd.f32 %v1779_v26, %v1667_v23  ;;  %v1782_v32 = vadd.f32 %v1781_v30, %v1780_v27 }
 0x1cf   : > { %v1297_v33 = vadd.f32 %v2399_v41, %v1261_v31  ;;  %v1264_v34 = vadd.f32 %v1782_v32, %v1670_v29 }
 0x1d1   : > { %1329 = vst [vmem:[%s2402_s9 + $0xf0] sm:$0xff] %v1297_v33  ;;  %v1298_v35 = vadd.f32 %v2399_v41, %v1264_v34 }
 0x1d3   : > { %1330 = vst [vmem:[%s2402_s9 + $0xf8] sm:$0xff] %v1298_v35 }
 0x1d4   : > { %2061 = shalt.err (!%p2058_p5)
}
 0x1d5   : > { %s2062_s29 = scalar_lea.hbm %s2469_s7, 4096  ;;  %s2066_s20 = scalar_lea.hbm %s2526_s3, 8192 }
 0x1d6   : > { %p2063_p9 = scmp.ne.s32.totalorder %s2469_s7, %s2062_s29  ;;  %p2067_p3 = scmp.lt.u32.totalorder %s2469_s7, %s2526_s3 }
 0x1d7   : > { %p2068_p7 = scmp.lt.u32.totalorder %s2066_s20, %s2062_s29  ;;  %p2070_p4 = scmp.lt.u32.totalorder %s2062_s29, %s2469_s7 }
 0x1d8   : > { %p2064_p1 = pnand %p2063_p9, %p2261_p10 }
 0x1d9   : > { %p2069_p13 = por %p2068_p7, %p2067_p3 }
 0x1da   : > { %p2065_p2 = pneg %p2064_p1 }
 0x1db   : > { %p2071_p6 = por %p2070_p4, %p2069_p13 }
 0x1dd   : > { %p2072_p8 = pnand %p2071_p6, %p2065_p2 }
 0x1df   : > { %2075 = shalt.err (!%p2072_p8)
}
 0x1e0   : > { %s2143_s9 = smov 128   ;;  %s2144_s10 = smov 8  }
 0x1e1   : > { %1789 = dma.vmem_to_hbm [thread:$0]  (%p2261_p10), %s2471_s11, 4096, %s2469_s7, %s1332_s8, %s2143_s9, %s2143_s9, %s2144_s10  }
 0x1e2 PF: > { %s1360_s18 = sand.u32 1, %s2114_s12   ;;  %p2544_p12 = scmp.ne.s32.totalorder %s2534_s23, 0 }
 0x1e3   : > { %p2545_p11 = scmp.ge.s32.totalorder %s2134_s17, 2  ;;  %s1361_s26 = scalar_lea.sflag [#allocation4], %s1360_s18 }
 0x1e5   : > { %p1800_p0 = pnand %p2545_p11, %p2544_p12 }
 0x1e7   : > { %2109 = dma.done.wait (!%p1800_p0), %s1361_s26, 4096  }
 0x1e8   : > { %2111 = vsyncadd (!%p1800_p0), %s1361_s26, 4294963200  ;;  %s20_s17 = sadd.s32 1, %s2134_s17   ;;  %s2546_s12 = smov %s2118_s13 }
 0x1e9   : > { %p17_p5 = scmp.ge.s32.totalorder %s20_s17, 4   ;;  %s2547_s13 = smov %s2122_s14 }
 0x1ea   : > { %s2548_s14 = smov %s2270_s5  ;;  %s2549_s15 = smov %s2130_s16 }
 0x1eb   : > { %s2550_s16 = smov %s2552_s28  ;;  %19 = sbr.rel (!%p17_p5) target bundleno = 7 (0x7), region = 86 }
 0x1f2   :  { %1366 = vsyncpa [#allocation3], 1 }
 0x1f3   :  { %1368 = vsyncpa [#allocation3 + $0x1], 1 }
 0x1f4   :  { %1369 = vsyncpa [#allocation6], 1 }
 0x1f5   :  { %1370 = vsyncpa [#allocation4], 1 }
 0x1f6   :  { %1372 = vsyncpa [#allocation4 + $0x1], 1 }

</bundles_post_ra>
